<compile_context>
chip_gen: v6e
topology: v6e:2x2x1
jax: 0.10.0
libtpu: 0.0.40
codegen_flags: <defaults>
</compile_context>

<pallas_src>
import jax
import jax.numpy as jnp
from jax.experimental import pallas as pl
from jax.experimental.pallas import tpu as pltpu


def _norm_kernel(img_ref, ss_ref, out_ref):
    # img_ref / out_ref: (block_r, block_l) tiles in the image dtype.
    # ss_ref: (block_r, 2) float32 tile; col 0 = 1/std, col 1 = -mean/std.
    scale = ss_ref[:, 0:1]
    shift = ss_ref[:, 1:2]
    x = img_ref[...].astype(jnp.float32)
    out_ref[...] = (x * scale + shift).astype(out_ref.dtype)


def _round_down(x: int, unit: int) -> int:
    return (x // unit) * unit


def normalization(img: jax.Array, mean: jax.Array, std: jax.Array) -> jax.Array:
    """img: (N, C, H, W); mean, std: (C,) — matches torch (C,1,1) broadcast."""
    N, C, H, W = img.shape
    R, L = N * C, H * W
    dtype = img.dtype
    itemsize = jnp.dtype(dtype).itemsize

    # Fold mean/std into a per-row affine, computed once in f32 on C scalars.
    # Kept in f32 all the way through the kernel (op is HBM-bound; f32 VALU is free).
    inv_std = 1.0 / std.astype(jnp.float32)
    shift_c = -mean.astype(jnp.float32) * inv_std
    ss = jnp.stack([jnp.tile(inv_std, N), jnp.tile(shift_c, N)], axis=-1)  # (R, 2) f32

    # Lane-dense 2D view of the contiguous per-channel slabs.
    img2 = img.reshape(R, L)

    total_bytes = R * L * itemsize

    # ~4 MiB tiles hit the knee of the HBM roofline curve; cap at total/8 so
    # large arrays always yield >=8 grid steps (keeps both v7x TCs busy and
    # leaves the pipeline something to overlap).
    MAX_BLOCK_BYTES = 4 * 1024 * 1024
    budget = min(MAX_BLOCK_BYTES, max(128 * 1024, total_bytes // 8))

    # Dtype-aware sublane unit: f32 -> 8 rows, bf16 -> 16, int8/fp8 -> 32.
    sub_unit = 8 * max(1, 4 // itemsize)

    # Lane (last-dim) tile: grow toward full L first (fewer, larger contiguous
    # DMA chunks, wide unmasked stores), multiple of 128 unless it is full-L.
    lane_cap = max(128, budget // (sub_unit * itemsize))
    if L <= lane_cap:
        block_l = L                                # full dim is always legal
    else:
        block_l = _round_down(lane_cap, 128)

    # Row tile: whatever remains of the byte budget, sublane-unit multiple
    # unless it is full-R.
    max_rows = max(sub_unit, budget // (block_l * itemsize))
    if R <= max_rows:
        block_r = R                                # full dim is always legal
    else:
        block_r = _round_down(max_rows, sub_unit)

    grid = (pl.cdiv(R, block_r), pl.cdiv(L, block_l))  # lane axis innermost

    # Explicit scoped-VMEM limit: double-buffered in + out tiles plus the
    # (lane-padded) ss tile, with slack. Stays well under v7x's 64 MiB
    # physical VMEM and avoids v5e's 16 MiB scoped default tripping on 4 MiB tiles.
    tile_bytes = block_r * block_l * itemsize
    ss_tile_bytes = block_r * 128 * 4              # (block_r, 2) f32 lane-pads to 128
    vmem_limit = int(min(2 * (2 * tile_bytes + ss_tile_bytes) + (4 << 20), 60 << 20))

    cost = pl.CostEstimate(
        flops=2 * R * L,
        bytes_accessed=2 * total_bytes + R * 2 * 4,
        transcendentals=0,
    )

    out2 = pl.pallas_call(
        _norm_kernel,
        out_shape=jax.ShapeDtypeStruct((R, L), dtype),
        grid=grid,
        in_specs=[
            pl.BlockSpec((block_r, block_l), lambda i, j: (i, j)),
            pl.BlockSpec((block_r, 2), lambda i, j: (i, 0)),
        ],
        out_specs=pl.BlockSpec((block_r, block_l), lambda i, j: (i, j)),
        compiler_params=pltpu.CompilerParams(
            dimension_semantics=("parallel", "parallel"),
            vmem_limit_bytes=vmem_limit,
        ),
        cost_estimate=cost,
    )(img2, ss)

    return out2.reshape(N, C, H, W)


if __name__ == "__main__":
    # Deterministic setup: standard ImageNet normalization constants
    # (what the style-transfer script passes to Normalization(mean, std)).
    N, C, H, W = 2, 3, 16, 16
    mean = jnp.array([0.485, 0.456, 0.406], dtype=jnp.float32)
    std = jnp.array([0.229, 0.224, 0.225], dtype=jnp.float32)

    key = jax.random.PRNGKey(0)
    img = jax.random.uniform(key, (N, C, H, W), dtype=jnp.float32)

    out = normalization(img, mean, std)
    out = jax.block_until_ready(out)

    # Reference check in plain JAX (same semantics as the torch module).
    # The kernel uses x*(1/std) + (-mean/std), which differs from the
    # divide-based reference by ~1 ulp in f32.
    ref = (img - mean.reshape(-1, 1, 1)) / std.reshape(-1, 1, 1)
    assert jnp.allclose(out, ref, atol=1e-5, rtol=1e-5), "mismatch vs reference"

    print("KERNEL_OK")
</pallas_src>

<mosaic_0001>
module attributes {stable_mosaic.version = 11 : i64} {
  func.func @_norm_kernel(%arg0: i32, %arg1: i32, %arg2: memref<6x256xf32, #tpu.memory_space<vmem>>, %arg3: memref<6x2xf32, #tpu.memory_space<vmem>>, %arg4: memref<6x256xf32, #tpu.memory_space<vmem>>) attributes {dimension_semantics = [#tpu.dimension_semantics<parallel>, #tpu.dimension_semantics<parallel>], iteration_bounds = array<i64: 1, 1>, scalar_prefetch = 0 : i64, scratch_operands = 0 : i64, tpu.core_type = #tpu.core_type<tc>, window_params = [{transform_indices = @transform_0, window_bounds = array<i64: 6, 256>}, {transform_indices = @transform_1, window_bounds = array<i64: 6, 2>}, {transform_indices = @transform_2, window_bounds = array<i64: 6, 256>}]} {
    %c0 = arith.constant 0 : index
    %c0_0 = arith.constant 0 : index
    %0 = vector.load %arg3[%c0, %c0_0] : memref<6x2xf32, #tpu.memory_space<vmem>>, vector<6x1xf32>
    %c0_1 = arith.constant 0 : index
    %c1 = arith.constant 1 : index
    %1 = vector.load %arg3[%c0_1, %c1] : memref<6x2xf32, #tpu.memory_space<vmem>>, vector<6x1xf32>
    %c0_2 = arith.constant 0 : index
    %c0_3 = arith.constant 0 : index
    %2 = vector.load %arg2[%c0_2, %c0_3] : memref<6x256xf32, #tpu.memory_space<vmem>>, vector<6x256xf32>
    %3 = vector.broadcast %0 : vector<6x1xf32> to vector<6x256xf32>
    %4 = arith.mulf %2, %3 : vector<6x256xf32>
    %5 = vector.broadcast %1 : vector<6x1xf32> to vector<6x256xf32>
    %6 = arith.addf %4, %5 : vector<6x256xf32>
    %c0_4 = arith.constant 0 : index
    %c0_5 = arith.constant 0 : index
    %7 = vector.load %arg4[%c0_4, %c0_5] : memref<6x256xf32, #tpu.memory_space<vmem>>, vector<6x256xf32>
    tpu.vector_store %arg4[%c0_4, %c0_5], %6 {strides = array<i32>} : memref<6x256xf32, #tpu.memory_space<vmem>>, vector<6x256xf32>,
    return
  }
  func.func @transform_0(%arg0: i32, %arg1: i32) -> (i32, i32) {
    %c0_i32 = arith.constant 0 : i32
    return %arg0, %arg1 : i32, i32
  }
  func.func @transform_1(%arg0: i32, %arg1: i32) -> (i32, i32) {
    %c0_i32 = arith.constant 0 : i32
    %c0_i32_0 = arith.constant 0 : i32
    return %arg0, %c0_i32 : i32, i32
  }
  func.func @transform_2(%arg0: i32, %arg1: i32) -> (i32, i32) {
    %c0_i32 = arith.constant 0 : i32
    return %arg0, %arg1 : i32, i32
  }
}

</mosaic_0001>

<bundles_post_ra>
// kernel: tpu_custom_call.1
= control target key start
LH: loop header
LB: loop body
LE: loop exit
PB: predicated region body
PF: predicated region fallthrough
CT: control target
= control target key end

     0   :  { %7 = vsyncpa [#allocation3], 0  ;;  %s135_s0 = inlined_call_operand.hbm [shape: f32[6,256], index: 0, kind: input, shape index: {}]   ;;  %s136_s1 = inlined_call_operand.vmem [shape: f32[6,2], index: 1, kind: input, shape index: {}]   ;;  %s137_s2 = inlined_call_operand.hbm [shape: f32[6,256], index: 2, kind: output, shape index: {}]  }
   0x1   :  { %8 = vsyncpa [#allocation4], 0  ;;  %s107_s9 = smov [#allocation2]  }
   0x2   :  { %s15_s10 = sshll.u32 %s107_s9, 4  ;;  %s16_s10 = int_to_ptr.vmem [resolvable:$true] %s15_s10 }
   0x3   :  { %s71_s11 = scalar_lea.vmem %s16_s10, 256  ;;  %p76_p1 = scmp.lt.s32.totalorder %s16_s10, %s16_s10 }
   0x4   :  { %p72_p0 = scmp.ne.s32.totalorder %s16_s10, %s71_s11  ;;  %p77_p2 = scmp.lt.s32.totalorder %s71_s11, %s71_s11 }
   0x6   :  { %p78_p3 = por %p77_p2, %p76_p1 }
   0x8   :  { %p79_p4 = pnand %p78_p3, %p72_p0 }
   0xa   :  { %82 = shalt.err (!%p79_p4)
}
   0xb   :  { %18 = dma.hbm_to_vmem [thread:$0]  %s135_s0, 256, %s16_s10, [#allocation3]  }
   0xc   :  { %103 = dma.done.wait [#allocation3], 256  }
   0xd   :  { %104 = vsyncadd [#allocation3], 4294967040  ;;  %v108_v0 = vmov 0   ;;  %v24_v1 = vld [vmem:[%s136_s1] sm:$0x3f]  ;;  %v109_v2 = vmov 1  }
   0xe   :  { %61 = vset.pattern.permute.xlu0 %v108_v0  ;;  %v25_v4 = vld [vmem:[#allocation2] sm:$0x3f]  ;;  %v26_v5 = vld [vmem:[#allocation2 + $0x8] sm:$0x3f]  ;;  %s110_s16 = smov [#allocation5]  }
   0xf   :  { %29 = vperm.xlu0 %61, %v24_v1   ;;  %s48_s17 = sshll.u32 %s110_s16, 4  ;;  %s49_s17 = int_to_ptr.vmem [resolvable:$true] %s48_s17 }
  0x10   :  { %s83_s0 = scalar_lea.vmem %s49_s17, 256  ;;  %p88_p6 = scmp.lt.s32.totalorder %s49_s17, %s49_s17 }
  0x11   :  { %p84_p5 = scmp.ne.s32.totalorder %s49_s17, %s83_s0  ;;  %p89_p7 = scmp.lt.s32.totalorder %s83_s0, %s83_s0 }
  0x13   :  { %62 = vset.pattern.permute.xlu0 %v109_v2  ;;  %p90_p8 = por %p89_p7, %p88_p6 }
  0x14   :  { %35 = vperm.xlu0 %62, %v24_v1  }
  0x15   :  { %p91_p9 = pnand %p90_p8, %p84_p5 }
  0x8a   :  { %v30_v3 = vpop.permute.xlu0 %29 }
  0x8b   :  { %v32_v6 = vmul.f32 %v30_v3, %v25_v4  ;;  %v33_v7 = vmul.f32 %v30_v3, %v26_v5 }
  0x8f   :  { %v36_v8 = vpop.permute.xlu0 %35 }
  0x90   :  { %v38_v9 = vadd.f32 %v36_v8, %v32_v6  ;;  %v39_v10 = vadd.f32 %v36_v8, %v33_v7 }
  0x92   :  { %40 = vst [vmem:[#allocation5] sm:$0x3f] %v38_v9  ;;  %41 = vst [vmem:[#allocation5 + $0x8] sm:$0x3f] %v39_v10 }
  0x93   :  { %94 = shalt.err (!%p91_p9)
}
  0x94   :  { %51 = dma.vmem_to_hbm [thread:$0]  %s49_s17, 256, %s137_s2, [#allocation4]  }
  0x95   :  { %105 = dma.done.wait [#allocation4], 256  }
  0x96   :  { %106 = vsyncadd [#allocation4], 4294967040 }
  0x97   :  { %55 = vsyncpa [#allocation3], 1 }
  0x98   :  { %56 = vsyncpa [#allocation4], 1 }

</bundles_post_ra>
